<compile_context>
chip_gen: v7x
topology: tpu7x:2x2x1
jax: 0.10.0
libtpu: 0.0.40
codegen_flags: <defaults>
</compile_context>

<pallas_src>
import math
import jax
import jax.numpy as jnp
from jax.experimental import pallas as pl
from jax.experimental.pallas import tpu as pltpu


NEG_INF = -1e30


# ---------------------------------------------------------------------------
# In-kernel helpers (traced inside the Pallas kernel body)
# ---------------------------------------------------------------------------

def _leaky_relu(x, slope=0.2):
    return jnp.where(x > 0, x, slope * x)


def _gelu_tanh(x):
    # tanh-form GeLU (maps onto the EUP slot; erf form differs by <~1e-3).
    c = 0.7978845608028654  # sqrt(2/pi)
    return 0.5 * x * (1.0 + jnp.tanh(c * (x + 0.044715 * x * x * x)))


def _gat_dense(h_in, w, asrc, adst, bias, adj):
    # h_in: [N, Fin]  w: [Fin, Fout]  asrc/adst/bias: [1, Fout]  adj: [N, N]
    h = jnp.dot(h_in, w, preferred_element_type=jnp.float32)          # [N, Fout] (MXU)

    # Per-node attention scalars on the VPU (no M=1 MXU matvec).
    a_dst = jnp.sum(h * adst, axis=-1, keepdims=True)                 # [N, 1]
    a_src = jnp.sum(h * asrc, axis=-1)                                # [N]

    e = _leaky_relu(a_dst + a_src[None, :])                           # [N, N]
    e = jnp.where(adj > 0, e, NEG_INF)                                # mask non-edges
    e = e - jnp.max(e, axis=-1, keepdims=True)
    p = jnp.where(adj > 0, jnp.exp(e), 0.0)
    denom = jnp.sum(p, axis=-1, keepdims=True)
    # EUP approx reciprocal; guard against fully-masked rows (no edges).
    alpha = p * pl.reciprocal(jnp.maximum(denom, 1e-20), approx=True)

    return jnp.dot(alpha, h, preferred_element_type=jnp.float32) + bias


# ---------------------------------------------------------------------------
# Fused Pallas kernel: conv1 -> GeLU -> conv2 -> pool -> GeLU -> fc1
# ---------------------------------------------------------------------------

def gcnnet_fused_kernel(x_ref, w1_ref, asrc1_ref, adst1_ref, b1_ref,
                        w2_ref, asrc2_ref, adst2_ref, b2_ref,
                        adj_ref, pool_ref, wfc_ref, bfc_ref,
                        logits_ref, score_ref):
    adj = adj_ref[...]

    # conv1 (GATConv 300(pad 384) -> 128) + GeLU
    h = _gat_dense(x_ref[...], w1_ref[...], asrc1_ref[...], adst1_ref[...],
                   b1_ref[...], adj)
    h = _gelu_tanh(h)
    # F.dropout in eval mode -> identity.

    # conv2 (GATConv 128 -> 128)
    node_logits = _gat_dense(h, w2_ref[...], asrc2_ref[...], adst2_ref[...],
                             b2_ref[...], adj)

    # per-graph masked mean over the "pos" nodes: [G, N] @ [N, 128]
    logits = jnp.dot(pool_ref[...], node_logits,
                     preferred_element_type=jnp.float32)              # [G, 128]
    logits_ref[...] = logits

    # GeLU + fc1 as a VPU lane reduction (avoid degenerate N=1 MXU matmul and
    # a last-dim-1 masked store).
    z = _gelu_tanh(logits)
    score = jnp.sum(z * wfc_ref[...], axis=-1, keepdims=True) + bfc_ref[...]  # [G, 1]
    score_ref[...] = jnp.broadcast_to(score, score_ref.shape)         # lane-dense store


# ---------------------------------------------------------------------------
# Wrapper
# ---------------------------------------------------------------------------

def _full_spec(shape):
    return pl.BlockSpec(shape, lambda i: (0,) * len(shape))


def gcnnet_fused(x, w1, asrc1, adst1, b1, w2, asrc2, adst2, b2,
                 adj, pool_mat, wfc, bfc):
    G = pool_mat.shape[0]
    Fout = w1.shape[1]
    ins = (x, w1, asrc1, adst1, b1, w2, asrc2, adst2, b2, adj, pool_mat, wfc, bfc)
    return pl.pallas_call(
        gcnnet_fused_kernel,
        grid=(1,),
        in_specs=[_full_spec(a.shape) for a in ins],
        out_specs=(_full_spec((G, Fout)), _full_spec((G, Fout))),
        out_shape=(jax.ShapeDtypeStruct((G, Fout), jnp.float32),   # logits
                   jax.ShapeDtypeStruct((G, Fout), jnp.float32)),  # score (lane-bcast)
        compiler_params=pltpu.CompilerParams(
            dimension_semantics=("arbitrary",)),
    )(*ins)


def gcnnet_forward(params, x, adj, pool_mat, y, num_graphs):
    logits, score_b = gcnnet_fused(
        x, params["w1"], params["asrc1"], params["adst1"], params["b1"],
        params["w2"], params["asrc2"], params["adst2"], params["b2"],
        adj, pool_mat, params["wfc"], params["bfc"])

    score = score_b[:, 0]                                   # [G]
    out0 = score.reshape(-1, num_graphs)                    # [1, G]

    outputs = (out0, logits)
    if y is not None:
        target = jnp.argmax(y.reshape(-1, num_graphs), axis=1)       # [1]
        logp = jax.nn.log_softmax(out0, axis=-1)
        loss = -jnp.mean(logp[jnp.arange(out0.shape[0]), target])
        outputs = (loss,) + outputs
    return outputs


# ---------------------------------------------------------------------------
# Deterministic parameters + synthetic graph data
# ---------------------------------------------------------------------------

def init_params(key):
    ks = jax.random.split(key, 10)
    scale = 0.1
    return {
        "w1": scale * jax.random.normal(ks[0], (300, 128), jnp.float32),
        "asrc1": scale * jax.random.normal(ks[1], (1, 128), jnp.float32),
        "adst1": scale * jax.random.normal(ks[2], (1, 128), jnp.float32),
        "b1": scale * jax.random.normal(ks[3], (1, 128), jnp.float32),
        "w2": scale * jax.random.normal(ks[4], (128, 128), jnp.float32),
        "asrc2": scale * jax.random.normal(ks[5], (1, 128), jnp.float32),
        "adst2": scale * jax.random.normal(ks[6], (1, 128), jnp.float32),
        "b2": scale * jax.random.normal(ks[7], (1, 128), jnp.float32),
        # fc1 weight stored as a row [1, 128] for the in-kernel lane reduction
        # (equivalent to the [128, 1] nn.Linear weight, transposed).
        "wfc": scale * jax.random.normal(ks[8], (1, 128), jnp.float32),
        "bfc": scale * jax.random.normal(ks[9], (1, 1), jnp.float32),
    }


def build_dense_graph(edge_index, N):
    """adjacency A[i, j] = 1 iff edge j -> i, plus self-loops."""
    src, dst = edge_index
    adj = jnp.zeros((N, N), jnp.float32).at[dst, src].set(1.0)
    idx = jnp.arange(N)
    adj = adj.at[idx, idx].set(1.0)
    return adj


def build_pool_matrix(batch, pos, num_graphs):
    """P[g, n] = (batch[n]==g & pos[n]) / count  -> masked mean via matmul."""
    sel = (batch[None, :] == jnp.arange(num_graphs)[:, None]) & pos[None, :]
    sel = sel.astype(jnp.float32)
    cnt = jnp.maximum(jnp.sum(sel, axis=1, keepdims=True), 1.0)  # guard empty graphs
    return sel / cnt


if __name__ == "__main__":
    key = jax.random.PRNGKey(0)
    k_x, k_p = jax.random.split(key)

    N, F_IN, G = 16, 300, 2

    # node features; pad the 300-wide feature dim to 384 (3*128) with zeros
    x = jax.random.normal(k_x, (N, F_IN), jnp.float32)
    x_pad = jnp.pad(x, ((0, 0), (0, 84)))

    # two graphs of 8 nodes each, bidirectional chain edges within each graph
    batch = jnp.array([0] * 8 + [1] * 8, jnp.int32)
    src_list, dst_list = [], []
    for g in range(G):
        base = g * 8
        for i in range(7):
            src_list += [base + i, base + i + 1]
            dst_list += [base + i + 1, base + i]
    edge_index = jnp.array([src_list, dst_list], jnp.int32)   # [2, 28]

    # "goal" node mask (data.pos interpreted as per-node boolean mask)
    pos = jnp.zeros((N,), jnp.bool_).at[jnp.array([2, 5, 9, 12])].set(True)

    # one-hot-ish labels per graph
    y = jnp.array([0.0, 1.0], jnp.float32)

    params = init_params(k_p)
    params["w1"] = jnp.pad(params["w1"], ((0, 84), (0, 0)))    # match padded F_IN

    adj = build_dense_graph(edge_index, N)
    pool_mat = build_pool_matrix(batch, pos, G)

    forward = jax.jit(gcnnet_forward, static_argnames=("num_graphs",))
    loss, out0, logits = forward(params, x_pad, adj, pool_mat, y, num_graphs=G)
    jax.block_until_ready((loss, out0, logits))

    assert out0.shape == (1, G)
    assert logits.shape == (G, 128)
    assert loss.shape == ()
    assert bool(jnp.isfinite(loss))
    print("KERNEL_OK")
</pallas_src>

<mosaic_0001>
module attributes {stable_mosaic.version = 11 : i64} {
  func.func @gcnnet_fused_kernel(%arg0: i32, %arg1: memref<16x384xf32, #tpu.memory_space<vmem>>, %arg2: memref<384x128xf32, #tpu.memory_space<vmem>>, %arg3: memref<1x128xf32, #tpu.memory_space<vmem>>, %arg4: memref<1x128xf32, #tpu.memory_space<vmem>>, %arg5: memref<1x128xf32, #tpu.memory_space<vmem>>, %arg6: memref<128x128xf32, #tpu.memory_space<vmem>>, %arg7: memref<1x128xf32, #tpu.memory_space<vmem>>, %arg8: memref<1x128xf32, #tpu.memory_space<vmem>>, %arg9: memref<1x128xf32, #tpu.memory_space<vmem>>, %arg10: memref<16x16xf32, #tpu.memory_space<vmem>>, %arg11: memref<2x16xf32, #tpu.memory_space<vmem>>, %arg12: memref<1x128xf32, #tpu.memory_space<vmem>>, %arg13: memref<1x1xf32, #tpu.memory_space<vmem>>, %arg14: memref<2x128xf32, #tpu.memory_space<vmem>>, %arg15: memref<2x128xf32, #tpu.memory_space<vmem>>) attributes {dimension_semantics = [#tpu.dimension_semantics<arbitrary>], iteration_bounds = array<i64: 1>, scalar_prefetch = 0 : i64, scratch_operands = 0 : i64, tpu.core_type = #tpu.core_type<tc>, window_params = [{pipeline_mode = #tpu.pipeline_mode<synchronous>, transform_indices = @transform_0, window_bounds = array<i64: 16, 384>}, {pipeline_mode = #tpu.pipeline_mode<synchronous>, transform_indices = @transform_1, window_bounds = array<i64: 384, 128>}, {pipeline_mode = #tpu.pipeline_mode<synchronous>, transform_indices = @transform_2, window_bounds = array<i64: 1, 128>}, {pipeline_mode = #tpu.pipeline_mode<synchronous>, transform_indices = @transform_3, window_bounds = array<i64: 1, 128>}, {pipeline_mode = #tpu.pipeline_mode<synchronous>, transform_indices = @transform_4, window_bounds = array<i64: 1, 128>}, {pipeline_mode = #tpu.pipeline_mode<synchronous>, transform_indices = @transform_5, window_bounds = array<i64: 128, 128>}, {pipeline_mode = #tpu.pipeline_mode<synchronous>, transform_indices = @transform_6, window_bounds = array<i64: 1, 128>}, {pipeline_mode = #tpu.pipeline_mode<synchronous>, transform_indices = @transform_7, window_bounds = array<i64: 1, 128>}, {pipeline_mode = #tpu.pipeline_mode<synchronous>, transform_indices = @transform_8, window_bounds = array<i64: 1, 128>}, {pipeline_mode = #tpu.pipeline_mode<synchronous>, transform_indices = @transform_9, window_bounds = array<i64: 16, 16>}, {pipeline_mode = #tpu.pipeline_mode<synchronous>, transform_indices = @transform_10, window_bounds = array<i64: 2, 16>}, {pipeline_mode = #tpu.pipeline_mode<synchronous>, transform_indices = @transform_11, window_bounds = array<i64: 1, 128>}, {pipeline_mode = #tpu.pipeline_mode<synchronous>, transform_indices = @transform_12, window_bounds = array<i64: 1, 1>}, {pipeline_mode = #tpu.pipeline_mode<synchronous>, transform_indices = @transform_13, window_bounds = array<i64: 2, 128>}, {pipeline_mode = #tpu.pipeline_mode<synchronous>, transform_indices = @transform_14, window_bounds = array<i64: 2, 128>}]} {
    %c0 = arith.constant 0 : index
    %c0_0 = arith.constant 0 : index
    %0 = vector.load %arg10[%c0, %c0_0] : memref<16x16xf32, #tpu.memory_space<vmem>>, vector<16x16xf32>
    %c0_1 = arith.constant 0 : index
    %c0_2 = arith.constant 0 : index
    %1 = vector.load %arg1[%c0_1, %c0_2] : memref<16x384xf32, #tpu.memory_space<vmem>>, vector<16x384xf32>
    %c0_3 = arith.constant 0 : index
    %c0_4 = arith.constant 0 : index
    %2 = vector.load %arg2[%c0_3, %c0_4] : memref<384x128xf32, #tpu.memory_space<vmem>>, vector<384x128xf32>
    %c0_5 = arith.constant 0 : index
    %c0_6 = arith.constant 0 : index
    %3 = vector.load %arg3[%c0_5, %c0_6] : memref<1x128xf32, #tpu.memory_space<vmem>>, vector<1x128xf32>
    %c0_7 = arith.constant 0 : index
    %c0_8 = arith.constant 0 : index
    %4 = vector.load %arg4[%c0_7, %c0_8] : memref<1x128xf32, #tpu.memory_space<vmem>>, vector<1x128xf32>
    %c0_9 = arith.constant 0 : index
    %c0_10 = arith.constant 0 : index
    %5 = vector.load %arg5[%c0_9, %c0_10] : memref<1x128xf32, #tpu.memory_space<vmem>>, vector<1x128xf32>
    %cst = arith.constant dense<0.000000e+00> : vector<16x128xf32>
    %6 = tpu.matmul %1, %2, %cst {dimension_numbers = #tpu.dot_dimension_numbers<[1], [0], [0], [1], [0, 0, 1, 1], [], []>} : vector<16x384xf32>, vector<384x128xf32>, vector<16x128xf32> -> vector<16x128xf32>
    %7 = vector.broadcast %4 : vector<1x128xf32> to vector<16x128xf32>
    %8 = arith.mulf %6, %7 : vector<16x128xf32>
    %cst_11 = arith.constant dense<0.000000e+00> : vector<16xf32>
    %9 = vector.multi_reduction <add>, %8, %cst_11 [1] : vector<16x128xf32> to vector<16xf32>
    %10 = vector.shape_cast %9 : vector<16xf32> to vector<16x1xf32>
    %11 = vector.broadcast %3 : vector<1x128xf32> to vector<16x128xf32>
    %12 = arith.mulf %6, %11 : vector<16x128xf32>
    %cst_12 = arith.constant dense<0.000000e+00> : vector<16xf32>
    %13 = vector.multi_reduction <add>, %12, %cst_12 [1] : vector<16x128xf32> to vector<16xf32>
    %14 = vector.shape_cast %13 : vector<16xf32> to vector<1x16xf32>
    %15 = vector.broadcast %10 : vector<16x1xf32> to vector<16x16xf32>
    %16 = vector.broadcast %14 : vector<1x16xf32> to vector<16x16xf32>
    %17 = arith.addf %15, %16 : vector<16x16xf32>
    %cst_13 = arith.constant 0.000000e+00 : f32
    %18 = vector.broadcast %cst_13 : f32 to vector<16x16xf32>
    %19 = arith.cmpf ogt, %17, %18 : vector<16x16xf32>
    %cst_14 = arith.constant 2.000000e-01 : f32
    %20 = vector.broadcast %cst_14 : f32 to vector<16x16xf32>
    %21 = arith.mulf %20, %17 : vector<16x16xf32>
    %22 = arith.select %19, %17, %21 : vector<16x16xi1>, vector<16x16xf32>
    %cst_15 = arith.constant 0.000000e+00 : f32
    %23 = vector.broadcast %cst_15 : f32 to vector<16x16xf32>
    %24 = arith.cmpf ogt, %0, %23 : vector<16x16xf32>
    %cst_16 = arith.constant -1.000000e+30 : f32
    %25 = vector.broadcast %cst_16 : f32 to vector<16x16xf32>
    %26 = arith.select %24, %22, %25 : vector<16x16xi1>, vector<16x16xf32>
    %cst_17 = arith.constant dense<0xFF800000> : vector<16xf32>
    %27 = vector.multi_reduction <maximumf>, %26, %cst_17 [1] : vector<16x16xf32> to vector<16xf32>
    %28 = vector.shape_cast %27 : vector<16xf32> to vector<16x1xf32>
    %29 = vector.broadcast %28 : vector<16x1xf32> to vector<16x16xf32>
    %30 = arith.subf %26, %29 : vector<16x16xf32>
    %cst_18 = arith.constant 0.000000e+00 : f32
    %31 = vector.broadcast %cst_18 : f32 to vector<16x16xf32>
    %32 = arith.cmpf ogt, %0, %31 : vector<16x16xf32>
    %33 = math.exp %30 : vector<16x16xf32>
    %cst_19 = arith.constant 0.000000e+00 : f32
    %34 = vector.broadcast %cst_19 : f32 to vector<16x16xf32>
    %35 = arith.select %32, %33, %34 : vector<16x16xi1>, vector<16x16xf32>
    %cst_20 = arith.constant dense<0.000000e+00> : vector<16xf32>
    %36 = vector.multi_reduction <add>, %35, %cst_20 [1] : vector<16x16xf32> to vector<16xf32>
    %37 = vector.shape_cast %36 : vector<16xf32> to vector<16x1xf32>
    %cst_21 = arith.constant 9.99999968E-21 : f32
    %38 = vector.broadcast %cst_21 : f32 to vector<16x1xf32>
    %39 = arith.maximumf %37, %38 : vector<16x1xf32>
    %40 = tpu.reciprocal %39 {approx = true} : vector<16x1xf32> -> vector<16x1xf32>
    %41 = vector.broadcast %40 : vector<16x1xf32> to vector<16x16xf32>
    %42 = arith.mulf %35, %41 : vector<16x16xf32>
    %cst_22 = arith.constant dense<0.000000e+00> : vector<16x128xf32>
    %43 = tpu.matmul %42, %6, %cst_22 {dimension_numbers = #tpu.dot_dimension_numbers<[1], [0], [0], [1], [0, 0, 1, 1], [], []>} : vector<16x16xf32>, vector<16x128xf32>, vector<16x128xf32> -> vector<16x128xf32>
    %44 = vector.broadcast %5 : vector<1x128xf32> to vector<16x128xf32>
    %45 = arith.addf %43, %44 : vector<16x128xf32>
    %cst_23 = arith.constant 5.000000e-01 : f32
    %46 = vector.broadcast %cst_23 : f32 to vector<16x128xf32>
    %47 = arith.mulf %46, %45 : vector<16x128xf32>
    %cst_24 = arith.constant 4.471500e-02 : f32
    %48 = vector.broadcast %cst_24 : f32 to vector<16x128xf32>
    %49 = arith.mulf %48, %45 : vector<16x128xf32>
    %50 = arith.mulf %49, %45 : vector<16x128xf32>
    %51 = arith.mulf %50, %45 : vector<16x128xf32>
    %52 = arith.addf %45, %51 : vector<16x128xf32>
    %cst_25 = arith.constant 0.797884583 : f32
    %53 = vector.broadcast %cst_25 : f32 to vector<16x128xf32>
    %54 = arith.mulf %53, %52 : vector<16x128xf32>
    %55 = math.tanh %54 : vector<16x128xf32>
    %cst_26 = arith.constant 1.000000e+00 : f32
    %56 = vector.broadcast %cst_26 : f32 to vector<16x128xf32>
    %57 = arith.addf %56, %55 : vector<16x128xf32>
    %58 = arith.mulf %47, %57 : vector<16x128xf32>
    %c0_27 = arith.constant 0 : index
    %c0_28 = arith.constant 0 : index
    %59 = vector.load %arg6[%c0_27, %c0_28] : memref<128x128xf32, #tpu.memory_space<vmem>>, vector<128x128xf32>
    %c0_29 = arith.constant 0 : index
    %c0_30 = arith.constant 0 : index
    %60 = vector.load %arg7[%c0_29, %c0_30] : memref<1x128xf32, #tpu.memory_space<vmem>>, vector<1x128xf32>
    %c0_31 = arith.constant 0 : index
    %c0_32 = arith.constant 0 : index
    %61 = vector.load %arg8[%c0_31, %c0_32] : memref<1x128xf32, #tpu.memory_space<vmem>>, vector<1x128xf32>
    %c0_33 = arith.constant 0 : index
    %c0_34 = arith.constant 0 : index
    %62 = vector.load %arg9[%c0_33, %c0_34] : memref<1x128xf32, #tpu.memory_space<vmem>>, vector<1x128xf32>
    %cst_35 = arith.constant dense<0.000000e+00> : vector<16x128xf32>
    %63 = tpu.matmul %58, %59, %cst_35 {dimension_numbers = #tpu.dot_dimension_numbers<[1], [0], [0], [1], [0, 0, 1, 1], [], []>} : vector<16x128xf32>, vector<128x128xf32>, vector<16x128xf32> -> vector<16x128xf32>
    %64 = vector.broadcast %61 : vector<1x128xf32> to vector<16x128xf32>
    %65 = arith.mulf %63, %64 : vector<16x128xf32>
    %cst_36 = arith.constant dense<0.000000e+00> : vector<16xf32>
    %66 = vector.multi_reduction <add>, %65, %cst_36 [1] : vector<16x128xf32> to vector<16xf32>
    %67 = vector.shape_cast %66 : vector<16xf32> to vector<16x1xf32>
    %68 = vector.broadcast %60 : vector<1x128xf32> to vector<16x128xf32>
    %69 = arith.mulf %63, %68 : vector<16x128xf32>
    %cst_37 = arith.constant dense<0.000000e+00> : vector<16xf32>
    %70 = vector.multi_reduction <add>, %69, %cst_37 [1] : vector<16x128xf32> to vector<16xf32>
    %71 = vector.shape_cast %70 : vector<16xf32> to vector<1x16xf32>
    %72 = vector.broadcast %67 : vector<16x1xf32> to vector<16x16xf32>
    %73 = vector.broadcast %71 : vector<1x16xf32> to vector<16x16xf32>
    %74 = arith.addf %72, %73 : vector<16x16xf32>
    %cst_38 = arith.constant 0.000000e+00 : f32
    %75 = vector.broadcast %cst_38 : f32 to vector<16x16xf32>
    %76 = arith.cmpf ogt, %74, %75 : vector<16x16xf32>
    %cst_39 = arith.constant 2.000000e-01 : f32
    %77 = vector.broadcast %cst_39 : f32 to vector<16x16xf32>
    %78 = arith.mulf %77, %74 : vector<16x16xf32>
    %79 = arith.select %76, %74, %78 : vector<16x16xi1>, vector<16x16xf32>
    %cst_40 = arith.constant 0.000000e+00 : f32
    %80 = vector.broadcast %cst_40 : f32 to vector<16x16xf32>
    %81 = arith.cmpf ogt, %0, %80 : vector<16x16xf32>
    %cst_41 = arith.constant -1.000000e+30 : f32
    %82 = vector.broadcast %cst_41 : f32 to vector<16x16xf32>
    %83 = arith.select %81, %79, %82 : vector<16x16xi1>, vector<16x16xf32>
    %cst_42 = arith.constant dense<0xFF800000> : vector<16xf32>
    %84 = vector.multi_reduction <maximumf>, %83, %cst_42 [1] : vector<16x16xf32> to vector<16xf32>
    %85 = vector.shape_cast %84 : vector<16xf32> to vector<16x1xf32>
    %86 = vector.broadcast %85 : vector<16x1xf32> to vector<16x16xf32>
    %87 = arith.subf %83, %86 : vector<16x16xf32>
    %cst_43 = arith.constant 0.000000e+00 : f32
    %88 = vector.broadcast %cst_43 : f32 to vector<16x16xf32>
    %89 = arith.cmpf ogt, %0, %88 : vector<16x16xf32>
    %90 = math.exp %87 : vector<16x16xf32>
    %cst_44 = arith.constant 0.000000e+00 : f32
    %91 = vector.broadcast %cst_44 : f32 to vector<16x16xf32>
    %92 = arith.select %89, %90, %91 : vector<16x16xi1>, vector<16x16xf32>
    %cst_45 = arith.constant dense<0.000000e+00> : vector<16xf32>
    %93 = vector.multi_reduction <add>, %92, %cst_45 [1] : vector<16x16xf32> to vector<16xf32>
    %94 = vector.shape_cast %93 : vector<16xf32> to vector<16x1xf32>
    %cst_46 = arith.constant 9.99999968E-21 : f32
    %95 = vector.broadcast %cst_46 : f32 to vector<16x1xf32>
    %96 = arith.maximumf %94, %95 : vector<16x1xf32>
    %97 = tpu.reciprocal %96 {approx = true} : vector<16x1xf32> -> vector<16x1xf32>
    %98 = vector.broadcast %97 : vector<16x1xf32> to vector<16x16xf32>
    %99 = arith.mulf %92, %98 : vector<16x16xf32>
    %cst_47 = arith.constant dense<0.000000e+00> : vector<16x128xf32>
    %100 = tpu.matmul %99, %63, %cst_47 {dimension_numbers = #tpu.dot_dimension_numbers<[1], [0], [0], [1], [0, 0, 1, 1], [], []>} : vector<16x16xf32>, vector<16x128xf32>, vector<16x128xf32> -> vector<16x128xf32>
    %101 = vector.broadcast %62 : vector<1x128xf32> to vector<16x128xf32>
    %102 = arith.addf %100, %101 : vector<16x128xf32>
    %c0_48 = arith.constant 0 : index
    %c0_49 = arith.constant 0 : index
    %103 = vector.load %arg11[%c0_48, %c0_49] : memref<2x16xf32, #tpu.memory_space<vmem>>, vector<2x16xf32>
    %cst_50 = arith.constant dense<0.000000e+00> : vector<2x128xf32>
    %104 = tpu.matmul %103, %102, %cst_50 {dimension_numbers = #tpu.dot_dimension_numbers<[1], [0], [0], [1], [0, 0, 1, 1], [], []>} : vector<2x16xf32>, vector<16x128xf32>, vector<2x128xf32> -> vector<2x128xf32>
    %c0_51 = arith.constant 0 : index
    %c0_52 = arith.constant 0 : index
    %105 = vector.load %arg14[%c0_51, %c0_52] : memref<2x128xf32, #tpu.memory_space<vmem>>, vector<2x128xf32>
    tpu.vector_store %arg14[%c0_51, %c0_52], %104 {strides = array<i32>} : memref<2x128xf32, #tpu.memory_space<vmem>>, vector<2x128xf32>,
    %cst_53 = arith.constant 5.000000e-01 : f32
    %106 = vector.broadcast %cst_53 : f32 to vector<2x128xf32>
    %107 = arith.mulf %106, %104 : vector<2x128xf32>
    %cst_54 = arith.constant 4.471500e-02 : f32
    %108 = vector.broadcast %cst_54 : f32 to vector<2x128xf32>
    %109 = arith.mulf %108, %104 : vector<2x128xf32>
    %110 = arith.mulf %109, %104 : vector<2x128xf32>
    %111 = arith.mulf %110, %104 : vector<2x128xf32>
    %112 = arith.addf %104, %111 : vector<2x128xf32>
    %cst_55 = arith.constant 0.797884583 : f32
    %113 = vector.broadcast %cst_55 : f32 to vector<2x128xf32>
    %114 = arith.mulf %113, %112 : vector<2x128xf32>
    %115 = math.tanh %114 : vector<2x128xf32>
    %cst_56 = arith.constant 1.000000e+00 : f32
    %116 = vector.broadcast %cst_56 : f32 to vector<2x128xf32>
    %117 = arith.addf %116, %115 : vector<2x128xf32>
    %118 = arith.mulf %107, %117 : vector<2x128xf32>
    %c0_57 = arith.constant 0 : index
    %c0_58 = arith.constant 0 : index
    %119 = vector.load %arg12[%c0_57, %c0_58] : memref<1x128xf32, #tpu.memory_space<vmem>>, vector<1x128xf32>
    %120 = vector.broadcast %119 : vector<1x128xf32> to vector<2x128xf32>
    %121 = arith.mulf %118, %120 : vector<2x128xf32>
    %cst_59 = arith.constant dense<0.000000e+00> : vector<2xf32>
    %122 = vector.multi_reduction <add>, %121, %cst_59 [1] : vector<2x128xf32> to vector<2xf32>
    %123 = vector.shape_cast %122 : vector<2xf32> to vector<2x1xf32>
    %c0_60 = arith.constant 0 : index
    %c0_61 = arith.constant 0 : index
    %124 = vector.load %arg13[%c0_60, %c0_61] : memref<1x1xf32, #tpu.memory_space<vmem>>, vector<1x1xf32>
    %125 = vector.broadcast %124 : vector<1x1xf32> to vector<2x1xf32>
    %126 = arith.addf %123, %125 : vector<2x1xf32>
    %127 = vector.shape_cast %126 : vector<2x1xf32> to vector<2x1xf32>
    %128 = vector.broadcast %127 : vector<2x1xf32> to vector<2x128xf32>
    %c0_62 = arith.constant 0 : index
    %c0_63 = arith.constant 0 : index
    %129 = vector.load %arg15[%c0_62, %c0_63] : memref<2x128xf32, #tpu.memory_space<vmem>>, vector<2x128xf32>
    tpu.vector_store %arg15[%c0_62, %c0_63], %128 {strides = array<i32>} : memref<2x128xf32, #tpu.memory_space<vmem>>, vector<2x128xf32>,
    return
  }
  func.func @transform_0(%arg0: i32) -> (i32, i32) {
    %c0_i32 = arith.constant 0 : i32
    %c0_i32_0 = arith.constant 0 : i32
    %c0_i32_1 = arith.constant 0 : i32
    return %c0_i32, %c0_i32_0 : i32, i32
  }
  func.func @transform_1(%arg0: i32) -> (i32, i32) {
    %c0_i32 = arith.constant 0 : i32
    %c0_i32_0 = arith.constant 0 : i32
    %c0_i32_1 = arith.constant 0 : i32
    return %c0_i32, %c0_i32_0 : i32, i32
  }
  func.func @transform_2(%arg0: i32) -> (i32, i32) {
    %c0_i32 = arith.constant 0 : i32
    %c0_i32_0 = arith.constant 0 : i32
    %c0_i32_1 = arith.constant 0 : i32
    return %c0_i32, %c0_i32_0 : i32, i32
  }
  func.func @transform_3(%arg0: i32) -> (i32, i32) {
    %c0_i32 = arith.constant 0 : i32
    %c0_i32_0 = arith.constant 0 : i32
    %c0_i32_1 = arith.constant 0 : i32
    return %c0_i32, %c0_i32_0 : i32, i32
  }
  func.func @transform_4(%arg0: i32) -> (i32, i32) {
    %c0_i32 = arith.constant 0 : i32
    %c0_i32_0 = arith.constant 0 : i32
    %c0_i32_1 = arith.constant 0 : i32
    return %c0_i32, %c0_i32_0 : i32, i32
  }
  func.func @transform_5(%arg0: i32) -> (i32, i32) {
    %c0_i32 = arith.constant 0 : i32
    %c0_i32_0 = arith.constant 0 : i32
    %c0_i32_1 = arith.constant 0 : i32
    return %c0_i32, %c0_i32_0 : i32, i32
  }
  func.func @transform_6(%arg0: i32) -> (i32, i32) {
    %c0_i32 = arith.constant 0 : i32
    %c0_i32_0 = arith.constant 0 : i32
    %c0_i32_1 = arith.constant 0 : i32
    return %c0_i32, %c0_i32_0 : i32, i32
  }
  func.func @transform_7(%arg0: i32) -> (i32, i32) {
    %c0_i32 = arith.constant 0 : i32
    %c0_i32_0 = arith.constant 0 : i32
    %c0_i32_1 = arith.constant 0 : i32
    return %c0_i32, %c0_i32_0 : i32, i32
  }
  func.func @transform_8(%arg0: i32) -> (i32, i32) {
    %c0_i32 = arith.constant 0 : i32
    %c0_i32_0 = arith.constant 0 : i32
    %c0_i32_1 = arith.constant 0 : i32
    return %c0_i32, %c0_i32_0 : i32, i32
  }
  func.func @transform_9(%arg0: i32) -> (i32, i32) {
    %c0_i32 = arith.constant 0 : i32
    %c0_i32_0 = arith.constant 0 : i32
    %c0_i32_1 = arith.constant 0 : i32
    return %c0_i32, %c0_i32_0 : i32, i32
  }
  func.func @transform_10(%arg0: i32) -> (i32, i32) {
    %c0_i32 = arith.constant 0 : i32
    %c0_i32_0 = arith.constant 0 : i32
    %c0_i32_1 = arith.constant 0 : i32
    return %c0_i32, %c0_i32_0 : i32, i32
  }
  func.func @transform_11(%arg0: i32) -> (i32, i32) {
    %c0_i32 = arith.constant 0 : i32
    %c0_i32_0 = arith.constant 0 : i32
    %c0_i32_1 = arith.constant 0 : i32
    return %c0_i32, %c0_i32_0 : i32, i32
  }
  func.func @transform_12(%arg0: i32) -> (i32, i32) {
    %c0_i32 = arith.constant 0 : i32
    %c0_i32_0 = arith.constant 0 : i32
    %c0_i32_1 = arith.constant 0 : i32
    return %c0_i32, %c0_i32_0 : i32, i32
  }
  func.func @transform_13(%arg0: i32) -> (i32, i32) {
    %c0_i32 = arith.constant 0 : i32
    %c0_i32_0 = arith.constant 0 : i32
    %c0_i32_1 = arith.constant 0 : i32
    return %c0_i32, %c0_i32_0 : i32, i32
  }
  func.func @transform_14(%arg0: i32) -> (i32, i32) {
    %c0_i32 = arith.constant 0 : i32
    %c0_i32_0 = arith.constant 0 : i32
    %c0_i32_1 = arith.constant 0 : i32
    return %c0_i32, %c0_i32_0 : i32, i32
  }
}

</mosaic_0001>

<bundles_post_ra>
// kernel: gcnnet_forward.1
= control target key start
LH: loop header
LB: loop body
LE: loop exit
PB: predicated region body
PF: predicated region fallthrough
CT: control target
= control target key end

     0   :  { %s1542_s0 = inlined_call_operand.vmem [shape: f32[16,384], index: 0, kind: input, shape index: {}]   ;;  %s1543_s1 = inlined_call_operand.hbm [shape: f32[384,128], index: 1, kind: input, shape index: {}]   ;;  %s1544_s2 = inlined_call_operand.vmem [shape: f32[1,128], index: 2, kind: input, shape index: {}]   ;;  %s1545_s3 = inlined_call_operand.vmem [shape: f32[1,128], index: 3, kind: input, shape index: {}]   ;;  %s1546_s4 = inlined_call_operand.vmem [shape: f32[1,128], index: 4, kind: input, shape index: {}]   ;;  %s1547_s5 = inlined_call_operand.hbm [shape: f32[128,128], index: 5, kind: input, shape index: {}]   ;;  %s1548_s6 = inlined_call_operand.vmem [shape: f32[1,128], index: 6, kind: input, shape index: {}]   ;;  %s1549_s7 = inlined_call_operand.vmem [shape: f32[1,128], index: 7, kind: input, shape index: {}]   ;;  %s1550_s8 = inlined_call_operand.vmem [shape: f32[1,128], index: 8, kind: input, shape index: {}]   ;;  %s1551_s9 = inlined_call_operand.vmem [shape: f32[16,16], index: 9, kind: input, shape index: {}]   ;;  %s1552_s10 = inlined_call_operand.vmem [shape: f32[2,16], index: 10, kind: input, shape index: {}]   ;;  %s1553_s11 = inlined_call_operand.hbm [shape: f32[1,128], index: 11, kind: input, shape index: {}]   ;;  %s1554_s12 = inlined_call_operand.<no memory space> [shape: f32[1,1], index: 12, kind: input, shape index: {}]   ;;  %s1555_s13 = inlined_call_operand.hbm [shape: f32[2,128], index: 13, kind: output, shape index: {0}]   ;;  %s1556_s14 = inlined_call_operand.vmem [shape: f32[2,128], index: 14, kind: output, shape index: {1}]  }
   0x1   :  { %v20_v0 = vstv %s1554_s12 }
   0x2   :  { %21 = vst [vmem:[#allocation2] sm:$0x1] %v20_v0 }
   0x3   :  { %22 = vsyncpa [#allocation4], 0 }
   0x4   :  { %23 = vsyncpa [#allocation7], 0 }
   0x5   :  { %24 = vsyncpa [#allocation5], 0  ;;  %s1306_s15 = smov [#allocation6]   ;;  %s1307_s17 = smov [#allocation3]  }
   0x6   :  { %s50_s16 = sshll.u32 %s1306_s15, 4  ;;  %s32_s18 = sshll.u32 %s1307_s17, 4  ;;  %s51_s16 = int_to_ptr.vmem [resolvable:$true] %s50_s16  ;;  %s1394_s18 = int_to_ptr.vmem [resolvable:$true] %s32_s18 }
   0x7   :  { %s1212_s21 = scalar_lea.hbm %s1547_s5, 2048 }
   0x8   :  { %p1213_p0 = scmp.ne.s32.totalorder %s1547_s5, %s1212_s21  ;;  %p1216_p1 = scmp.lt.u32.totalorder %s1212_s21, %s1547_s5 }
   0xa   :  { %p1218_p2 = pnand %p1216_p1, %p1213_p0 }
   0xc   :  { %1221 = shalt.err (!%p1218_p2)
}
   0xd   :  { %s1222_s25 = scalar_lea.vmem %s51_s16, 2048  ;;  %p1227_p4 = scmp.lt.s32.totalorder %s51_s16, %s51_s16 }
   0xe   :  { %p1223_p3 = scmp.ne.s32.totalorder %s51_s16, %s1222_s25  ;;  %p1228_p5 = scmp.lt.s32.totalorder %s1222_s25, %s1222_s25 }
  0x10   :  { %p1229_p6 = por %p1228_p5, %p1227_p4 }
  0x12   :  { %p1230_p7 = pnand %p1229_p6, %p1223_p3 }
  0x14   :  { %1233 = shalt.err (!%p1230_p7)
}
  0x15   :  { %s1308_s26 = smov 128   ;;  %s1309_s27 = smov 8  }
  0x16   :  { %56 = dma.hbm_to_vmem [thread:$0]  %s1547_s5, 2048, %s51_s16, [#allocation7], %s1308_s26, %s1308_s26, %s1309_s27  }
  0x17   :  { %s1234_s17 = scalar_lea.hbm %s1543_s1, 6144 }
  0x18   :  { %p1235_p8 = scmp.ne.s32.totalorder %s1543_s1, %s1234_s17  ;;  %p1238_p9 = scmp.lt.u32.totalorder %s1234_s17, %s1543_s1 }
  0x1a   :  { %p1240_p10 = pnand %p1238_p9, %p1235_p8 }
  0x1c   :  { %1243 = shalt.err (!%p1240_p10)
}
  0x1d   :  { %s1244_s23 = scalar_lea.vmem %s1394_s18, 6144  ;;  %p1249_p12 = scmp.lt.s32.totalorder %s1394_s18, %s1394_s18 }
  0x1e   :  { %p1245_p11 = scmp.ne.s32.totalorder %s1394_s18, %s1244_s23  ;;  %p1250_p13 = scmp.lt.s32.totalorder %s1244_s23, %s1244_s23 }
  0x20   :  { %p1251_p0 = por %p1250_p13, %p1249_p12 }
  0x22   :  { %p1252_p1 = pnand %p1251_p0, %p1245_p11 }
  0x24   :  { %1255 = shalt.err (!%p1252_p1)
}
  0x25   :  { %38 = dma.hbm_to_vmem [thread:$0]  %s1543_s1, 6144, %s1394_s18, [#allocation4], %s1308_s26, %s1308_s26, %s1309_s27  }
  0x26   :  { %s1310_s12 = smov [#allocation8]   ;;  %s1256_s29 = scalar_lea.hbm %s1553_s11, 16 }
  0x27   :  { %s73_s24 = sshll.u32 %s1310_s12, 4  ;;  %p1257_p2 = scmp.ne.s32.totalorder %s1553_s11, %s1256_s29  ;;  %s74_s24 = int_to_ptr.vmem [resolvable:$true] %s73_s24 }
  0x28   :  { %p1260_p3 = scmp.lt.u32.totalorder %s1256_s29, %s1553_s11 }
  0x2a   :  { %p1262_p4 = pnand %p1260_p3, %p1257_p2 }
  0x2c   :  { %1265 = shalt.err (!%p1262_p4)
}
  0x2d   :  { %s1266_s20 = scalar_lea.vmem %s74_s24, 16  ;;  %s1270_s1 = scalar_lea.vmem %s74_s24, 32 }
  0x2e   :  { %p1267_p5 = scmp.ne.s32.totalorder %s74_s24, %s1266_s20  ;;  %p1271_p6 = scmp.lt.s32.totalorder %s74_s24, %s74_s24 }
  0x2f   :  { %p1272_p7 = scmp.lt.s32.totalorder %s1270_s1, %s1266_s20 }
  0x31   :  { %p1273_p8 = por %p1272_p7, %p1271_p6 }
  0x33   :  { %p1274_p9 = pnand %p1273_p8, %p1267_p5 }
  0x35   :  { %1277 = shalt.err (!%p1274_p9)
}
  0x36   :  { %76 = dma.hbm_to_vmem [thread:$0]  %s1553_s11, 16, %s74_s24, [#allocation7]  }
  0x37   :  { %1300 = dma.done.wait [#allocation4], 6144  }
  0x38   :  { %1301 = vsyncadd [#allocation4], 4294961152 }
  0x39   :  { %1302 = dma.done.wait [#allocation7], 2064  }
  0x3a   :  { %1303 = vsyncadd [#allocation7], 4294965232  ;;  %v112_v1 = vld [vmem:[#allocation3 + $0x80] sm:$0xff]  ;;  %v113_v2 = vld [vmem:[#allocation3 + $0x88] sm:$0xff]  ;;  %vm334_vm0 = vcmask 130112   ;;  %vm361_vm5 = vcmask 130048  }
  0x3b   :  { %v96_v3 = vld [vmem:[#allocation3] sm:$0xff]  ;;  %v1071_v4 = vpack.c.bf16 %v113_v2, %v112_v1  ;;  %v97_v5 = vld [vmem:[#allocation3 + $0x8] sm:$0xff]  ;;  %v114_v10 = vld [vmem:[#allocation3 + $0x90] sm:$0xff]  ;;  %vm1312_vm8 = vmmov 0   ;;  %vm844_vm9 = vcmask 1041408  }
  0x3c   :  { %v128_v6 = vld [vmem:[#allocation3 + $0x100] sm:$0xff]  ;;  %v129_v7 = vld [vmem:[#allocation3 + $0x108] sm:$0xff]  ;;  %v1073_v8 = vpack.c.bf16 %v97_v5, %v96_v3  ;;  %v115_v11 = vld [vmem:[#allocation3 + $0x98] sm:$0xff] }
  0x3d   :  { %v1103_v9 = vpack.c.bf16 %v129_v7, %v128_v6  ;;  %v98_v12 = vld [vmem:[#allocation3 + $0x10] sm:$0xff]  ;;  %1072 = vmatprep.subr.bf16.mxu0 %v1071_v4  ;;  %v1075_v13 = vpack.c.bf16 %v115_v11, %v114_v10  ;;  %v99_v14 = vld [vmem:[#allocation3 + $0x18] sm:$0xff]  ;;  %v116_v19 = vld [vmem:[#allocation3 + $0xa0] sm:$0xff] }
  0x3e   :  { %v130_v15 = vld [vmem:[#allocation3 + $0x110] sm:$0xff]  ;;  %v131_v16 = vld [vmem:[#allocation3 + $0x118] sm:$0xff]  ;;  %1074 = vmatpush3.bf16.msra.mxu0 %v1073_v8  ;;  %v1077_v17 = vpack.c.bf16 %v99_v14, %v98_v12  ;;  %v117_v20 = vld [vmem:[#allocation3 + $0xa8] sm:$0xff] }
  0x3f   :  { %1104 = vmatprep.subr.bf16.mxu1 %v1103_v9  ;;  %v1107_v18 = vpack.c.bf16 %v131_v16, %v130_v15  ;;  %v100_v21 = vld [vmem:[#allocation3 + $0x20] sm:$0xff]  ;;  %1076 = vmatprep.subr.bf16.mxu0 %v1075_v13  ;;  %v1079_v22 = vpack.c.bf16 %v117_v20, %v116_v19  ;;  %v101_v23 = vld [vmem:[#allocation3 + $0x28] sm:$0xff]  ;;  %v118_v27 = vld [vmem:[#allocation3 + $0xb0] sm:$0xff] }
  0x40   :  { %1106 = vmatpush3.bf16.msra.mxu1 %v1103_v9  ;;  %v132_v24 = vld [vmem:[#allocation3 + $0x120] sm:$0xff]  ;;  %v133_v25 = vld [vmem:[#allocation3 + $0x128] sm:$0xff]  ;;  %v119_v28 = vld [vmem:[#allocation3 + $0xb8] sm:$0xff]  ;;  %v1081_v31 = vpack.c.bf16 %v101_v23, %v100_v21 }
  0x41   :  { %1108 = vmatprep.subr.bf16.mxu1 %v1107_v18  ;;  %v1111_v26 = vpack.c.bf16 %v133_v25, %v132_v24  ;;  %v134_v29 = vld [vmem:[#allocation3 + $0x130] sm:$0xff]  ;;  %v135_v30 = vld [vmem:[#allocation3 + $0x138] sm:$0xff]  ;;  %v1083_v32 = vpack.c.bf16 %v119_v28, %v118_v27  ;;  %v120_v36 = vld [vmem:[#allocation3 + $0xc0] sm:$0xff] }
  0x42   :  { %1078 = vmatpush3.bf16.msra.mxu0 %v1077_v17  ;;  %v102_v33 = vld [vmem:[#allocation3 + $0x30] sm:$0xff]  ;;  %v103_v34 = vld [vmem:[#allocation3 + $0x38] sm:$0xff]  ;;  %v1115_v35 = vpack.c.bf16 %v135_v30, %v134_v29  ;;  %v121_v37 = vld [vmem:[#allocation3 + $0xc8] sm:$0xff] }
  0x43   :  { %1080 = vmatprep.subr.bf16.mxu0 %v1079_v22  ;;  %v136_v38 = vld [vmem:[#allocation3 + $0x140] sm:$0xff]  ;;  %v137_v39 = vld [vmem:[#allocation3 + $0x148] sm:$0xff]  ;;  %v1085_v40 = vpack.c.bf16 %v103_v34, %v102_v33  ;;  %v1087_v41 = vpack.c.bf16 %v121_v37, %v120_v36  ;;  %v122_v45 = vld [vmem:[#allocation3 + $0xd0] sm:$0xff] }
  0x44   :  { %1110 = vmatpush3.bf16.msra.mxu1 %v1107_v18  ;;  %v104_v42 = vld [vmem:[#allocation3 + $0x40] sm:$0xff]  ;;  %v105_v43 = vld [vmem:[#allocation3 + $0x48] sm:$0xff]  ;;  %v1119_v44 = vpack.c.bf16 %v137_v39, %v136_v38  ;;  %v123_v46 = vld [vmem:[#allocation3 + $0xd8] sm:$0xff] }
  0x45   :  { %1112 = vmatprep.subr.bf16.mxu1 %v1111_v26  ;;  %v138_v47 = vld [vmem:[#allocation3 + $0x150] sm:$0xff]  ;;  %v139_v48 = vld [vmem:[#allocation3 + $0x158] sm:$0xff]  ;;  %v1089_v49 = vpack.c.bf16 %v105_v43, %v104_v42  ;;  %v91_v50 = vld [vmem:[%s1542_s0 + $0x8] sm:$0xff]  ;;  %v1091_v52 = vpack.c.bf16 %v123_v46, %v122_v45 }
  0x46   :  { %1082 = vmatpush3.bf16.msra.mxu0 %v1081_v31  ;;  %v92_v51 = vld [vmem:[%s1542_s0 + $0x10] sm:$0xff]  ;;  %v107_v54 = vld [vmem:[#allocation3 + $0x58] sm:$0xff]  ;;  %v1123_v55 = vpack.c.bf16 %v139_v48, %v138_v47  ;;  %v124_v56 = vld [vmem:[#allocation3 + $0xe0] sm:$0xff]  ;;  %211 = vmatprep.mubr.f32.mxu0 %v91_v50 }
  0x47   :  { %1084 = vmatprep.subr.bf16.mxu0 %v1083_v32  ;;  %v106_v53 = vld [vmem:[#allocation3 + $0x50] sm:$0xff]  ;;  %v125_v57 = vld [vmem:[#allocation3 + $0xe8] sm:$0xff]  ;;  %v140_v58 = vld [vmem:[#allocation3 + $0x160] sm:$0xff]  ;;  %1012 = vmatprep.mubr.f32.mxu1 %v92_v51  ;;  %v323_v32 = vlaneseq }
  0x48   :  { %1114 = vmatpush3.bf16.msra.mxu1 %v1111_v26  ;;  %v141_v59 = vld [vmem:[#allocation3 + $0x168] sm:$0xff]  ;;  %v1093_v60 = vpack.c.bf16 %v107_v54, %v106_v53  ;;  %v1095_v61 = vpack.c.bf16 %v125_v57, %v124_v56  ;;  %v108_v62 = vld [vmem:[#allocation3 + $0x60] sm:$0xff]  ;;  %v126_v1 = vld [vmem:[#allocation3 + $0xf0] sm:$0xff] }
  0x49   :  { %1116 = vmatprep.subr.bf16.mxu1 %v1115_v35  ;;  %v109_v63 = vld [vmem:[#allocation3 + $0x68] sm:$0xff]  ;;  %v1127_v0 = vpack.c.bf16 %v141_v59, %v140_v58  ;;  %v127_v2 = vld [vmem:[#allocation3 + $0xf8] sm:$0xff]  ;;  %v142_v3 = vld [vmem:[#allocation3 + $0x170] sm:$0xff]  ;;  %v324_v33 = vand.u32 127, %v323_v32  ;;  %v326_v34 = vshrl.u32 %v323_v32, 7 }
  0x4a   :  { %1086 = vmatpush3.bf16.msra.mxu0 %v1085_v40  ;;  %v143_v4 = vld [vmem:[#allocation3 + $0x178] sm:$0xff]  ;;  %v1097_v5 = vpack.c.bf16 %v109_v63, %v108_v62  ;;  %v1099_v6 = vpack.c.bf16 %v127_v2, %v126_v1  ;;  %v110_v7 = vld [vmem:[#allocation3 + $0x70] sm:$0xff]  ;;  %v95_v12 = vld [vmem:[%s1542_s0 + $0x28] sm:$0xff] }
  0x4b   :  { %1088 = vmatprep.subr.bf16.mxu0 %v1087_v41  ;;  %v111_v8 = vld [vmem:[#allocation3 + $0x78] sm:$0xff]  ;;  %v1131_v9 = vpack.c.bf16 %v143_v4, %v142_v3  ;;  %v1461_v37 = vsub.s32 %v324_v33, %v326_v34  ;;  %v1470_v43 = vld [vmem:[%s1551_s9 + $0x8] sm:$0xff] }
  0x4c   :  { %1118 = vmatpush3.bf16.msra.mxu1 %v1115_v35  ;;  %v1101_v10 = vpack.c.bf16 %v111_v8, %v110_v7  ;;  %v90_v11 = vld [vmem:[%s1542_s0] sm:$0xff]  ;;  %v93_v14 = vld [vmem:[%s1542_s0 + $0x18] sm:$0xff]  ;;  %v329_v35 = vadd.s32 4294967288, %v324_v33  ;;  %vm358_vm1 = vcmp.gt.f32.partialorder %v1470_v43, 0.0  ;;  %v506_v32 = vld [vmem:[#allocation6 + $0x68] sm:$0xff] }
  0x4d   :  { %1120 = vmatprep.subr.bf16.mxu1 %v1119_v44  ;;  %v94_v13 = vld [vmem:[%s1542_s0 + $0x20] sm:$0xff] }
  0x4e   :  { %1090 = vmatpush3.bf16.msra.mxu0 %v1089_v49  ;;  %v883_v20 = vld [vmem:[%s1544_s2] ss:$0 sm:$0xff]  ;;  %v1463_v39 = vsub.s32 %v329_v35, %v326_v34  ;;  %v507_v34 = vld [vmem:[#allocation6 + $0x70] sm:$0xff] }
  0x4f   :  { %1092 = vmatprep.subr.bf16.mxu0 %v1091_v52  ;;  %v882_v21 = vld [vmem:[%s1545_s3] ss:$0 sm:$0xff] }
  0x50   :  { %1122 = vmatpush3.bf16.msra.mxu1 %v1119_v44  ;;  %v1475_v44 = vld [vmem:[%s1551_s9] sm:$0xff] }
  0x51   :  { %1124 = vmatprep.subr.bf16.mxu1 %v1123_v55  ;;  %vm357_vm2 = vcmp.gt.f32.partialorder %v1475_v44, 0.0  ;;  %v508_v35 = vld [vmem:[#allocation6 + $0x78] sm:$0xff]  ;;  %v1311_v44 = vmov 0.0|0.0  }
  0x52   :  { %1094 = vmatpush3.bf16.msra.mxu0 %v1093_v60 }
  0x53   :  { %1096 = vmatprep.subr.bf16.mxu0 %v1095_v61 }
  0x54   :  { %1126 = vmatpush3.bf16.msra.mxu1 %v1123_v55 }
  0x55   :  { %1128 = vmatprep.subr.bf16.mxu1 %v1127_v0 }
  0x56   :  { %1098 = vmatpush3.bf16.msra.mxu0 %v1097_v5  ;;  %v493_v5 = vld [vmem:[#allocation6] sm:$0xff] }
  0x57   :  { %1100 = vmatprep.subr.bf16.mxu0 %v1099_v6  ;;  %v494_v6 = vld [vmem:[#allocation6 + $0x8] sm:$0xff] }
  0x58   :  { %1130 = vmatpush3.bf16.msra.mxu1 %v1127_v0  ;;  %v1139_v7 = vpack.c.bf16 %v494_v6, %v493_v5  ;;  %v887_v6 = vld [vmem:[%s1549_s7] ss:$0 sm:$0xff] }
  0x59   :  { %1132 = vmatprep.subr.bf16.mxu1 %v1131_v9 }
  0x5a   :  { %1102 = vmatpush3.bf16.msra.mxu0 %v1101_v10 }
  0x5b   :  { %1140 = vmatprep.subr.bf16.mxu0 %v1139_v7 }
  0x5c   :  { %1134 = vmatpush3.bf16.msra.mxu1 %v1131_v9 }
  0x5d   :  { %212 = vmatmul.mubr.f32.vlgmr.msra.gmra.mrb[0].mxu0 %v90_v11 }
  0x5e   :  { %216 = vmatprep.mubr.f32.mxu0 %v94_v13  ;;  %1142 = vmatpush3.bf16.msra.mxu0 %v1139_v7 }
  0x5f   :  { %1013 = vmatmul.mubr.f32.vlgmr.msra.gmra.mrb[0].mxu1 %v95_v12 }
  0x61   :  { %217 = vmatmul.mubr.f32.gmra.mrb[2].mxu0 %v93_v14 }
 0x130   :  { %v927_v15 = vpop.f32.mrb[0].mxu0 }
 0x131   :  { %v928_v16 = vpop.f32.mrb[1].mxu0 }
 0x132   :  { %v1014_v17 = vpop.f32.mrb[0].mxu1  ;;  %v929_v18 = vadd.f32 %v928_v16, %v927_v15  ;;  %v495_v16 = vld [vmem:[#allocation6 + $0x10] sm:$0xff] }
 0x133   :  { %v288_v19 = vpop.f32.mrb[1].mxu1 }
 0x134   :  { %v289_v22 = vadd.f32 %v929_v18, %v288_v19  ;;  %v930_v23 = vpop.f32.mrb[2].mxu0  ;;  %v497_v19 = vld [vmem:[#allocation6 + $0x20] sm:$0xff] }
 0x135   :  { %v931_v24 = vpop.f32.mrb[3].mxu0 }
 0x136   :  { %v932_v25 = vadd.f32 %v931_v24, %v930_v23  ;;  %v315_v26 = vmul.f32 %v883_v20, %v289_v22  ;;  %v303_v27 = vmul.f32 %v882_v21, %v289_v22  ;;  %v500_v23 = vld [vmem:[#allocation6 + $0x38] sm:$0xff] }
 0x138   :  { %v294_v28 = vadd.f32 %v1014_v17, %v932_v25  ;;  %317 = vadd.xlane.f32.xlu0 %v315_v26  ;;  %305 = vadd.xlane.f32.xlu1 %v303_v27  ;;  %v496_v17 = vld [vmem:[#allocation6 + $0x18] sm:$0xff]  ;;  %v501_v25 = vld [vmem:[#allocation6 + $0x40] sm:$0xff]  ;;  %v502_v26 = vld [vmem:[#allocation6 + $0x48] sm:$0xff] }
 0x139   :  { %v1143_v18 = vpack.c.bf16 %v496_v17, %v495_v16  ;;  %v1155_v27 = vpack.c.bf16 %v502_v26, %v501_v25 }
 0x13a   :  { %v1135_v29 = vpack.c.bf16 %v294_v28, %v289_v22  ;;  %v316_v30 = vmul.f32 %v883_v20, %v294_v28  ;;  %v304_v31 = vmul.f32 %v882_v21, %v294_v28  ;;  %v498_v20 = vld [vmem:[#allocation6 + $0x28] sm:$0xff]  ;;  %v499_v22 = vld [vmem:[#allocation6 + $0x30] sm:$0xff] }
 0x13b   :  { %1144 = vmatprep.subr.bf16.mxu0 %v1143_v18  ;;  %v1147_v21 = vpack.c.bf16 %v498_v20, %v497_v19  ;;  %v1151_v24 = vpack.c.bf16 %v500_v23, %v499_v22  ;;  %v503_v28 = vld [vmem:[#allocation6 + $0x50] sm:$0xff] }
 0x13c   :  { %1136 = vmatprep.subr.bf16.mxu1 %v1135_v29  ;;  %319 = vadd.xlane.f32.xlu0 %v316_v30  ;;  %v505_v30 = vld [vmem:[#allocation6 + $0x60] sm:$0xff] }
 0x13d   :  { %307 = vadd.xlane.f32.xlu1 %v304_v31  ;;  %1138 = vmatpush3.bf16.msra.mxu1 %v1135_v29  ;;  %v504_v29 = vld [vmem:[#allocation6 + $0x58] sm:$0xff]  ;;  %v1163_v33 = vpack.c.bf16 %v506_v32, %v505_v30 }
 0x13e   :  { %1146 = vmatpush3.bf16.msra.mxu0 %v1143_v18  ;;  %v1159_v31 = vpack.c.bf16 %v504_v29, %v503_v28 }
 0x13f   :  { %1148 = vmatprep.subr.bf16.mxu0 %v1147_v21 }
 0x142   :  { %1150 = vmatpush3.bf16.msra.mxu0 %v1147_v21 }
 0x143   :  { %1152 = vmatprep.subr.bf16.mxu0 %v1151_v24 }
 0x146   :  { %1154 = vmatpush3.bf16.msra.mxu0 %v1151_v24 }
 0x147   :  { %1156 = vmatprep.subr.bf16.mxu0 %v1155_v27 }
 0x14a   :  { %1158 = vmatpush3.bf16.msra.mxu0 %v1155_v27 }
 0x14b   :  { %1160 = vmatprep.subr.bf16.mxu0 %v1159_v31 }
 0x14e   :  { %1162 = vmatpush3.bf16.msra.mxu0 %v1159_v31 }
 0x14f   :  { %1164 = vmatprep.subr.bf16.mxu0 %v1163_v33 }
 0x152   :  { %1166 = vmatpush3.bf16.msra.mxu0 %v1163_v33 }
 0x1c5   :  { %v318_v36 = vpop.xlane.xlu0 %317  ;;  %v306_v38 = vpop.xlane.xlu1 %305 }
 0x1c6   :  { %v328_v41 = vrot.slane %v318_v36, %v1461_v37  ;;  %v1167_v36 = vpack.c.bf16 %v508_v35, %v507_v34 }
 0x1c8   :  { %1168 = vmatprep.subr.bf16.mxu0 %v1167_v36 }
 0x1c9   :  { %v320_v40 = vpop.xlane.xlu0 %319  ;;  %1170 = vmatpush3.bf16.msra.mxu0 %v1167_v36 }
 0x1ca   :  { %v333_v42 = vrot.slane %v320_v40, %v1463_v39  ;;  %v308_v46 = vpop.xlane.xlu1 %307 }
 0x1cc   :  { %v335_v45 = vsel %vm334_vm0, %v333_v42, %v328_v41 }
 0x1cd   :  { %v349_v47 = vadd.f32 %v335_v45, %v306_v38  ;;  %v350_v48 = vadd.f32 %v335_v45, %v308_v46  ;;  %v884_v38 = vld [vmem:[%s1546_s4] ss:$0 sm:$0xff] }
 0x1cf   :  { %v354_v49 = vmul.f32 0.2, %v350_v48  ;;  %vm352_vm3 = vcmp.gt.f32.partialorder %v350_v48, 0.0  ;;  %vm351_vm4 = vcmp.gt.f32.partialorder %v349_v47, 0.0  ;;  %v353_v50 = vmul.f32 0.2, %v349_v47 }
 0x1d1   :  { %v356_v51 = vsel %vm352_vm3, %v350_v48, %v354_v49  ;;  %v355_v52 = vsel %vm351_vm4, %v349_v47, %v353_v50 }
 0x1d2   :  { %v360_v53 = vsel %vm358_vm1, %v356_v51, -1e+30  ;;  %v359_v54 = vsel %vm357_vm2, %v355_v52, -1e+30 }
 0x1d3   :  { %v365_v55 = vsel %vm361_vm5, %v360_v53, -inf  ;;  %v362_v56 = vsel %vm361_vm5, %v359_v54, -inf }
 0x1d4   :  { %366 = vmax.xlane.f32.xlu1 %v365_v55  ;;  %363 = vmax.xlane.f32.xlu0 %v362_v56 }
 0x261   :  { %v367_v57 = vpop.xlane.xlu1 %366  ;;  %v364_v58 = vpop.xlane.xlu0 %363 }
 0x262   :  { %v369_v59 = vsub.f32 %v360_v53, %v367_v57  ;;  %v368_v60 = vsub.f32 %v359_v54, %v364_v58 }
 0x264   :  { %v372_v61 = vmul.f32 1.442695, %v369_v59  ;;  %v370_v62 = vmul.f32 1.442695, %v368_v60 }
 0x266   :  { %1190 = vpow2.f32 %v372_v61 }
 0x267   :  { %1192 = vpow2.f32 %v370_v62 }
 0x270   :  { %v1191_v63 = vpop.eup %1190 }
 0x271   :  { %v1193_v0 = vpop.eup %1192  ;;  %v375_v1 = vsel %vm358_vm1, %v1191_v63, 0.0 }
 0x272   :  { %v379_v2 = vsel %vm361_vm5, %v375_v1, 0.0  ;;  %v374_v3 = vsel %vm357_vm2, %v1193_v0, 0.0  ;;  %v888_v0 = vld [vmem:[%s1548_s6] ss:$0 sm:$0xff] }
 0x273   :  { %380 = vadd.xlane.f32.xlu1 %v379_v2  ;;  %v376_v4 = vsel %vm361_vm5, %v374_v3, 0.0 }
 0x274   :  { %377 = vadd.xlane.f32.xlu0 %v376_v4 }
 0x300   :  { %v381_v8 = vpop.xlane.xlu1 %380 }
 0x301   :  { %v383_v9 = vmax.f32 %v381_v8, 1e-20  ;;  %v378_v10 = vpop.xlane.xlu0 %377 }
 0x302   :  { %v382_v11 = vmax.f32 %v378_v10, 1e-20 }
 0x303   :  { %1194 = vrcp.f32 %v383_v9 }
 0x304   :  { %1196 = vrcp.f32 %v382_v11 }
 0x30d   :  { %v1195_v12 = vpop.eup %1194 }
 0x30e   :  { %v1197_v13 = vpop.eup %1196  ;;  %v387_v14 = vmul.f32 %v1195_v12, %v375_v1 }
 0x30f   :  { %v386_v15 = vmul.f32 %v1197_v13, %v374_v3 }
 0x311   :  { %1019 = vmatprep.mubr.msk.f32.mxu1 %vm361_vm5, %v386_v15 }
 0x312   :  { %1020 = vmatmul.mubr.msk.f32.vlgmr.msra.gmra.mrb[2].mxu1 %vm361_vm5, %v387_v14 }
 0x3e5   :  { %v1021_v40 = vpop.f32.mrb[2].mxu1 }
 0x3e6   :  { %v472_v41 = vadd.f32 %v1021_v40, %v884_v38  ;;  %v466_v42 = vpop.f32.mrb[3].mxu1 }
 0x3e7   :  { %v467_v45 = vadd.f32 %v884_v38, %v466_v42 }
 0x3e8   :  { %v478_v46 = vmul.f32 0.044715, %v472_v41  ;;  %v476_v61 = vmul.f32 0.5, %v472_v41 }
 0x3e9   :  { %v477_v47 = vmul.f32 0.044715, %v467_v45  ;;  %v475_v59 = vmul.f32 0.5, %v467_v45 }
 0x3ea   :  { %v480_v48 = vmul.f32 %v478_v46, %v472_v41 }
 0x3eb   :  { %v479_v49 = vmul.f32 %v477_v47, %v467_v45  ;;  %v1313_v47 = vmov 0.0  }
 0x3ec   :  { %v482_v50 = vmul.f32 %v480_v48, %v472_v41  ;;  %v889_v48 = vld [vmem:[%s1550_s8] ss:$0 sm:$0xff]  ;;  %s1315_s8 = smov [#allocation9]  }
 0x3ed   :  { %v481_v51 = vmul.f32 %v479_v49, %v467_v45 }
 0x3ee   :  { %v484_v52 = vadd.f32 %v482_v50, %v472_v41 }
 0x3ef   :  { %v483_v53 = vadd.f32 %v481_v51, %v467_v45 }
 0x3f0   :  { %v486_v54 = vmul.f32 0.7978846, %v484_v52 }
 0x3f1   :  { %v485_v55 = vmul.f32 0.7978846, %v483_v53 }
 0x3f2   :  { %1198 = vtanh.f32 %v486_v54  ;;  %v752_v54 = vld [vmem:[%s1552_s10] sm:$0x3]  ;;  %s868_s10 = sshll.u32 %s1315_s8, 4  ;;  %s869_s10 = int_to_ptr.vmem [resolvable:$true] %s868_s10 }
 0x3f3   :  { %1200 = vtanh.f32 %v485_v55  ;;  %s1278_s22 = scalar_lea.vmem %s869_s10, 32  ;;  %p1283_p11 = scmp.lt.s32.totalorder %s869_s10, %s869_s10 }
 0x3f4   :  { %p1279_p10 = scmp.ne.s32.totalorder %s869_s10, %s1278_s22  ;;  %p1284_p12 = scmp.lt.s32.totalorder %s1278_s22, %s1278_s22 }
 0x3f6   :  { %p1285_p13 = por %p1284_p12, %p1283_p11 }
 0x3f8   :  { %p1286_p0 = pnand %p1285_p13, %p1279_p10 }
 0x3fc   :  { %v1199_v56 = vpop.eup %1198 }
 0x3fd   :  { %v1201_v57 = vpop.eup %1200  ;;  %v490_v58 = vadd.f32 1.0, %v1199_v56 }
 0x3fe   :  { %v489_v60 = vadd.f32 1.0, %v1201_v57 }
 0x3ff   :  { %v492_v63 = vmul.f32 %v490_v58, %v476_v61 }
 0x400   :  { %v491_v62 = vmul.f32 %v489_v60, %v475_v59 }
 0x402   :  { %1054 = vmatprep.mubr.f32.mxu0 %v491_v62 }
 0x403   :  { %1055 = vmatmul.mubr.f32.vlgmr.msra.gmra.mrb[4].mxu0 %v492_v63 }
 0x4d6   :  { %v1056_v1 = vpop.f32.mrb[4].mxu0 }
 0x4d7   :  { %v578_v2 = vpop.f32.mrb[5].mxu0  ;;  %v606_v3 = vmul.f32 %v1056_v1, %v888_v0  ;;  %v594_v7 = vmul.f32 %v1056_v1, %v887_v6 }
 0x4d8   :  { %v1171_v4 = vpack.c.bf16 %v1056_v1, %v578_v2  ;;  %v605_v5 = vmul.f32 %v888_v0, %v578_v2  ;;  %v593_v8 = vmul.f32 %v887_v6, %v578_v2  ;;  %v893_v1 = vld [vmem:[#allocation8] ss:$0 sm:$0xff]  ;;  %v894_v6 = vld [vmem:[#allocation2] ss:$0 sm:$0xff] }
 0x4d9   :  { %609 = vadd.xlane.f32.xlu1 %v606_v3 }
 0x4da   :  { %1172 = vmatprep.subr.bf16.mxu1 %v1171_v4  ;;  %607 = vadd.xlane.f32.xlu0 %v605_v5  ;;  %v1314_v5 = vmov 0  }
 0x4db   :  { %1174 = vmatpush3.bf16.msra.mxu1 %v1171_v4  ;;  %1188 = vset.pattern.permute.xlu1 %v1314_v5 }
 0x4dc   :  { %1175 = vmatprep.subr.bf16.mxu1 %v1311_v44  ;;  %1189 = vset.pattern.permute.xlu0 %v1314_v5 }
 0x4dd   :  { %597 = vadd.xlane.f32.xlu1 %v594_v7 }
 0x4de   :  { %595 = vadd.xlane.f32.xlu0 %v593_v8 }
 0x566   :  { %v610_v9 = vpop.xlane.xlu1 %609 }
 0x567   :  { %v620_v10 = vrot.slane %v610_v9, %v1463_v39  ;;  %v608_v11 = vpop.xlane.xlu0 %607 }
 0x568   :  { %v616_v12 = vrot.slane %v608_v11, %v1461_v37 }
 0x56a   :  { %v598_v13 = vpop.xlane.xlu1 %597  ;;  %v621_v14 = vsel %vm334_vm0, %v620_v10, %v616_v12 }
 0x56b   :  { %v630_v15 = vadd.f32 %v621_v14, %v598_v13  ;;  %v596_v16 = vpop.xlane.xlu0 %595 }
 0x56c   :  { %v629_v17 = vadd.f32 %v621_v14, %v596_v16 }
 0x56d   :  { %v634_v18 = vmul.f32 0.2, %v630_v15  ;;  %vm632_vm6 = vcmp.gt.f32.partialorder %v630_v15, 0.0 }
 0x56e   :  { %v633_v19 = vmul.f32 0.2, %v629_v17  ;;  %vm631_vm7 = vcmp.gt.f32.partialorder %v629_v17, 0.0 }
 0x56f   :  { %v636_v20 = vsel %vm632_vm6, %v630_v15, %v634_v18 }
 0x570   :  { %v638_v21 = vsel %vm358_vm1, %v636_v20, -1e+30  ;;  %v635_v22 = vsel %vm631_vm7, %v629_v17, %v633_v19 }
 0x571   :  { %v642_v39 = vsel %vm361_vm5, %v638_v21, -inf  ;;  %v637_v37 = vsel %vm357_vm2, %v635_v22, -1e+30 }
 0x572   :  { %643 = vmax.xlane.f32.xlu1 %v642_v39  ;;  %v639_v23 = vsel %vm361_vm5, %v637_v37, -inf }
 0x573   :  { %640 = vmax.xlane.f32.xlu0 %v639_v23 }
 0x5ff   :  { %v644_v24 = vpop.xlane.xlu1 %643 }
 0x600   :  { %v646_v25 = vsub.f32 %v638_v21, %v644_v24  ;;  %v641_v26 = vpop.xlane.xlu0 %640 }
 0x601   :  { %v645_v27 = vsub.f32 %v637_v37, %v641_v26 }
 0x602   :  { %v649_v28 = vmul.f32 1.442695, %v646_v25 }
 0x603   :  { %v647_v29 = vmul.f32 1.442695, %v645_v27 }
 0x604   :  { %1202 = vpow2.f32 %v649_v28 }
 0x605   :  { %1204 = vpow2.f32 %v647_v29 }
 0x60e   :  { %v1203_v30 = vpop.eup %1202 }
 0x60f   :  { %v1205_v31 = vpop.eup %1204  ;;  %v652_v32 = vsel %vm358_vm1, %v1203_v30, 0.0 }
 0x610   :  { %v656_v33 = vsel %vm361_vm5, %v652_v32, 0.0  ;;  %v651_v34 = vsel %vm357_vm2, %v1205_v31, 0.0 }
 0x611   :  { %657 = vadd.xlane.f32.xlu1 %v656_v33  ;;  %v653_v35 = vsel %vm361_vm5, %v651_v34, 0.0 }
 0x612   :  { %654 = vadd.xlane.f32.xlu0 %v653_v35 }
 0x69e   :  { %v658_v36 = vpop.xlane.xlu1 %657 }
 0x69f   :  { %v660_v38 = vmax.f32 %v658_v36, 1e-20  ;;  %v655_v40 = vpop.xlane.xlu0 %654 }
 0x6a0   :  { %v659_v41 = vmax.f32 %v655_v40, 1e-20 }
 0x6a1   :  { %1206 = vrcp.f32 %v660_v38 }
 0x6a2   :  { %1208 = vrcp.f32 %v659_v41 }
 0x6ab   :  { %v1207_v42 = vpop.eup %1206 }
 0x6ac   :  { %v1209_v45 = vpop.eup %1208  ;;  %v664_v43 = vmul.f32 %v1207_v42, %v652_v32 }
 0x6ad   :  { %v663_v46 = vmul.f32 %v1209_v45, %v651_v34 }
 0x6af   :  { %1061 = vmatprep.mubr.msk.f32.mxu1 %vm361_vm5, %v663_v46 }
 0x6b0   :  { %1062 = vmatmul.mubr.msk.f32.vlgmr.msra.gmra.mrb[4].mxu1 %vm361_vm5, %v664_v43 }
 0x6b1   :  { %1068 = vmatprep.mubr.msk.f32.mxu1 %vm1312_vm8, %v1313_v47 }
 0x783   :  { %v1063_v49 = vpop.f32.mrb[4].mxu1 }
 0x784   :  { %v749_v50 = vadd.f32 %v1063_v49, %v889_v48  ;;  %v743_v51 = vpop.f32.mrb[5].mxu1 }
 0x785   :  { %v744_v52 = vadd.f32 %v889_v48, %v743_v51 }
 0x787   :  { %v1176_v53 = vpack.c.bf16 %v749_v50, %v744_v52 }
 0x789   :  { %1177 = vmatpush3.bf16.msra.mxu1 %v1176_v53 }
 0x78c   :  { %1069 = vmatmul.mubr.msk.f32.vlgmr.msra.gmra.mrb[6].mxu1 %vm361_vm5, %v752_v54 }
 0x85f   :  { %v822_v55 = vpop.f32.mrb[6].mxu1 }
 0x860   :  { %v828_v56 = vmul.f32 0.044715, %v822_v55  ;;  %826 = vst [vmem:[#allocation9] sm:$0x3] %v822_v55  ;;  %v1070_v57 = vpop.f32.mrb[7].mxu1  ;;  %v827_v63 = vmul.f32 0.5, %v822_v55 }
 0x862   :  { %v829_v58 = vmul.f32 %v828_v56, %v822_v55 }
 0x864   :  { %v830_v59 = vmul.f32 %v829_v58, %v822_v55 }
 0x866   :  { %v831_v60 = vadd.f32 %v830_v59, %v822_v55 }
 0x868   :  { %v832_v61 = vmul.f32 0.7978846, %v831_v60 }
 0x86a   :  { %1210 = vtanh.f32 %v832_v61 }
 0x874   :  { %v1211_v62 = vpop.eup %1210 }
 0x875   :  { %v834_v0 = vadd.f32 1.0, %v1211_v62 }
 0x877   :  { %v835_v2 = vmul.f32 %v834_v0, %v827_v63 }
 0x879   :  { %v843_v3 = vmul.f32 %v893_v1, %v835_v2 }
 0x87b   :  { %v845_v4 = vsel %vm844_vm9, %v843_v3, 0.0 }
 0x87c   :  { %846 = vadd.xlane.f32.xlu0 %v845_v4 }
 0x909   :  { %v847_v7 = vpop.xlane.xlu0 %846 }
 0x90a   :  { %v855_v8 = vadd.f32 %v894_v6, %v847_v7 }
 0x90c   :  { %858 = vperm.xlu1 %1188, %v855_v8  }
 0x90d   :  { %1289 = shalt.err (!%p1286_p0)
}
 0x90e   :  { %s1290_s16 = scalar_lea.hbm %s1555_s13, 32 }
 0x90f   :  { %p1291_p1 = scmp.ne.s32.totalorder %s1555_s13, %s1290_s16  ;;  %p1294_p2 = scmp.lt.u32.totalorder %s1290_s16, %s1555_s13 }
 0x911   :  { %p1296_p3 = pnand %p1294_p2, %p1291_p1 }
 0x913   :  { %1299 = shalt.err (!%p1296_p3)
}
 0x914   :  { %871 = dma.vmem_to_hbm [thread:$0]  %s869_s10, 32, %s1555_s13, [#allocation5]  }
 0x98b   :  { %v859_v9 = vpop.permute.xlu1 %858 }
 0x98c   :  { %861 = vst [vmem:[%s1556_s14] sm:$0x3] %v859_v9 }
 0x98d   :  { %1304 = dma.done.wait [#allocation5], 32  }
 0x98e   :  { %1305 = vsyncadd [#allocation5], 4294967264 }
 0x98f   :  { %879 = vsyncpa [#allocation4], 1 }
 0x990   :  { %880 = vsyncpa [#allocation7], 1 }
 0x991   :  { %881 = vsyncpa [#allocation5], 1 }

</bundles_post_ra>
